<compile_context>
chip_gen: v7x
topology: tpu7x:2x2x1
jax: 0.10.0
libtpu: 0.0.40
codegen_flags: <defaults>
</compile_context>

<pallas_src>
import functools

import jax
import jax.numpy as jnp
from jax.experimental import pallas as pl
from jax.experimental.pallas import tpu as pltpu


def _round_up(n, m):
    return ((n + m - 1) // m) * m


def _derived_vmem_limit():
    """Per-generation scoped-VMEM limit (bytes), with headroom."""
    cap = None
    try:
        info = pltpu.get_tpu_info()
        cap = getattr(info, "vmem_capacity_bytes", None)
    except Exception:
        cap = None
    if not cap or cap <= 0:
        cap = 128 << 20  # conservative default (v5e/v6e physical VMEM)
    # ~85% of physical: ~109 MiB on v5e/v6e, ~54 MiB on v7x (64 MiB per TC).
    return min(int(cap * 0.85), 110 << 20)


def _vmem_need(tile_rows, tile_k, d_in_p, x_item, w_item, chunked):
    """Rough VMEM footprint (bytes) of one pipelined grid step."""
    need = 0
    need += 2 * tile_rows * d_in_p * x_item        # x tile (double-buffered)
    need += 2 * tile_rows * d_in_p * x_item        # out tile
    need += 2 * d_in_p * tile_k * w_item           # W1 tile
    need += 2 * tile_k * d_in_p * w_item           # W2 tile
    need += 2 * (tile_k + 3 * d_in_p) * w_item     # b1 + b2/gamma/beta
    need += tile_rows * tile_k * 4                 # relu(h) f32 intermediate
    if chunked:
        need += tile_rows * d_in_p * 4             # f32 accumulator scratch
    return need


def _layer_norm_f32(y, g_ref, beta_ref, eps, d_valid):
    """LayerNorm over the valid feature columns of a zero-padded f32 tile."""
    inv_d = 1.0 / d_valid
    mean = jnp.sum(y, axis=-1, keepdims=True) * inv_d
    # Raw-moment variance: padded columns of y are exactly zero by
    # construction, so they contribute to neither sum and the statistics are
    # taken over the true d_valid features.  No iota/mask work needed.
    var = jnp.sum(y * y, axis=-1, keepdims=True) * inv_d - mean * mean
    var = jnp.maximum(var, 0.0)
    ynorm = (y - mean) * jax.lax.rsqrt(var + eps)
    return (ynorm * g_ref[...].astype(jnp.float32)
            + beta_ref[...].astype(jnp.float32))


def _ffn_kernel_fused(x_ref, w1_ref, b1_ref, w2_ref, b2_ref, g_ref, beta_ref,
                      o_ref, *, eps, d_valid):
    """Fast path: full FFN weights resident, one grid step per row tile."""
    x = x_ref[...]
    h = jnp.dot(x, w1_ref[...], preferred_element_type=jnp.float32)
    h = jnp.maximum(h + b1_ref[...].astype(jnp.float32), 0.0)
    y = jnp.dot(h.astype(w2_ref.dtype), w2_ref[...],
                preferred_element_type=jnp.float32)
    # TODO(synk): dropout omitted (eval-mode identity); training-mode masking
    # would need pltpu.prng_seed / prng_random_bits here.
    y = y + b2_ref[...].astype(jnp.float32) + x.astype(jnp.float32)  # residual
    o_ref[...] = _layer_norm_f32(y, g_ref, beta_ref, eps, d_valid).astype(
        o_ref.dtype)


def _ffn_kernel_chunked(x_ref, w1_ref, b1_ref, w2_ref, b2_ref, g_ref, beta_ref,
                        o_ref, acc_ref, *, eps, d_valid):
    """Slow path: hidden axis tiled; f32 accumulator across k steps."""
    k = pl.program_id(1)

    @pl.when(k == 0)
    def _():
        acc_ref[...] = jnp.zeros_like(acc_ref)

    # First matmul in native dtype (bf16 feeds the MXU directly), f32 accum.
    h = jnp.dot(x_ref[...], w1_ref[...], preferred_element_type=jnp.float32)
    h = jnp.maximum(h + b1_ref[...].astype(jnp.float32), 0.0)

    # Second matmul chunk accumulated into the resident f32 scratch.
    acc_ref[...] += jnp.dot(h.astype(w2_ref.dtype), w2_ref[...],
                            preferred_element_type=jnp.float32)

    @pl.when(k == pl.num_programs(1) - 1)
    def _():
        x32 = x_ref[...].astype(jnp.float32)
        y = acc_ref[...] + b2_ref[...].astype(jnp.float32) + x32  # residual
        o_ref[...] = _layer_norm_f32(y, g_ref, beta_ref, eps, d_valid).astype(
            o_ref.dtype)


def positionwise_feed_forward(x, w1, b1, w2, b2, gamma, beta, *,
                              eps=1e-6, tile_rows=512, tile_k=1024,
                              vmem_budget_bytes=None):
    """x: (B, S, d_in). Weights stored in x @ W layout:
       w1: (d_in, d_hid), w2: (d_hid, d_in). Returns (B, S, d_in).

       vmem_budget_bytes caps only the tile-selection budget (useful in tests
       to force the k-chunked path); the compiler's scoped-VMEM limit is
       always derived from the hardware."""
    B, S, d_in = x.shape
    d_hid = w1.shape[1]
    N = B * S

    x_item = jnp.dtype(x.dtype).itemsize
    w_item = jnp.dtype(w1.dtype).itemsize

    # Lane-dense feature padding (multiples of 128).
    d_in_p = _round_up(d_in, 128)
    d_hid_p_full = _round_up(d_hid, 128)

    # Row tile: multiple of the dtype's sublane packing, floored at 128 when
    # N allows (keeps MXU passes full), capped at the padded row count.
    sub = {4: 8, 2: 16, 1: 32}.get(x_item, 8)
    rows_cap = _round_up(N, sub)
    tile_rows = min(_round_up(max(tile_rows, 128), sub), rows_cap)

    # Per-generation VMEM budget (with headroom for compiler scratch).
    hw_limit = _derived_vmem_limit()
    budget = hw_limit if vmem_budget_bytes is None else min(
        hw_limit, int(vmem_budget_bytes))
    budget = int(budget * 0.9)

    def fits(tr, tk, chunked):
        return _vmem_need(tr, tk, d_in_p, x_item, w_item, chunked) <= budget

    if fits(tile_rows, d_hid_p_full, chunked=False):
        # Fast path: whole FFN weights resident per row tile -> no k axis,
        # no accumulator scratch, no per-k read-modify-write.
        chunked = False
        tile_k = d_hid_p_full
    else:
        chunked = True
        tile_k = max(128, min(_round_up(tile_k, 128), d_hid_p_full))
        # Shrink tile_k first (does not change weight-byte intensity).
        while tile_k > 128 and not fits(tile_rows, tile_k, True):
            tile_k = max(128, _round_up(tile_k // 2, 128))
        # Last resort: shrink the row tile (lowers weight-reuse intensity).
        while tile_rows > max(128, sub) and not fits(tile_rows, tile_k, True):
            tile_rows = max(sub, _round_up(tile_rows // 2, sub))

    d_hid_p = d_hid_p_full if not chunked else _round_up(d_hid, tile_k)
    N_p = _round_up(N, tile_rows)
    n_row_tiles = N_p // tile_rows

    x2 = jnp.pad(x.reshape(N, d_in), ((0, N_p - N), (0, d_in_p - d_in)))
    w1p = jnp.pad(w1, ((0, d_in_p - d_in), (0, d_hid_p - d_hid)))
    b1p = jnp.pad(b1, (0, d_hid_p - d_hid)).reshape(1, d_hid_p)
    w2p = jnp.pad(w2, ((0, d_hid_p - d_hid), (0, d_in_p - d_in)))
    b2p = jnp.pad(b2, (0, d_in_p - d_in)).reshape(1, d_in_p)
    gp = jnp.pad(gamma, (0, d_in_p - d_in)).reshape(1, d_in_p)
    bp = jnp.pad(beta, (0, d_in_p - d_in)).reshape(1, d_in_p)

    # Accurate HBM-traffic hint: weights are re-streamed once per row tile.
    weight_bytes = (w1p.size * w1p.dtype.itemsize
                    + w2p.size * w2p.dtype.itemsize
                    + b1p.size * b1p.dtype.itemsize
                    + b2p.size * b2p.dtype.itemsize
                    + gp.size * gp.dtype.itemsize
                    + bp.size * bp.dtype.itemsize)
    cost = pl.CostEstimate(
        flops=4 * N_p * d_in_p * d_hid_p,               # two matmuls
        transcendentals=N_p,                            # rsqrt per row
        bytes_accessed=(x2.size * x2.dtype.itemsize
                        + N_p * d_in_p * x_item
                        + n_row_tiles * weight_bytes),
    )

    compiler_params = pltpu.CompilerParams(
        dimension_semantics=(("parallel",) if not chunked
                             else ("parallel", "arbitrary")),
        vmem_limit_bytes=hw_limit)
    kern_kwargs = dict(eps=eps, d_valid=d_in)

    if not chunked:
        out = pl.pallas_call(
            functools.partial(_ffn_kernel_fused, **kern_kwargs),
            out_shape=jax.ShapeDtypeStruct((N_p, d_in_p), x.dtype),
            grid_spec=pltpu.PrefetchScalarGridSpec(
                num_scalar_prefetch=0,
                grid=(n_row_tiles,),
                in_specs=[
                    pl.BlockSpec((tile_rows, d_in_p), lambda i: (i, 0)),  # x
                    pl.BlockSpec((d_in_p, d_hid_p), lambda i: (0, 0)),    # W1
                    pl.BlockSpec((1, d_hid_p), lambda i: (0, 0)),         # b1
                    pl.BlockSpec((d_hid_p, d_in_p), lambda i: (0, 0)),    # W2
                    pl.BlockSpec((1, d_in_p), lambda i: (0, 0)),          # b2
                    pl.BlockSpec((1, d_in_p), lambda i: (0, 0)),          # gamma
                    pl.BlockSpec((1, d_in_p), lambda i: (0, 0)),          # beta
                ],
                out_specs=pl.BlockSpec((tile_rows, d_in_p), lambda i: (i, 0)),
            ),
            compiler_params=compiler_params,
            cost_estimate=cost,
        )(x2, w1p, b1p, w2p, b2p, gp, bp)
    else:
        out = pl.pallas_call(
            functools.partial(_ffn_kernel_chunked, **kern_kwargs),
            out_shape=jax.ShapeDtypeStruct((N_p, d_in_p), x.dtype),
            grid_spec=pltpu.PrefetchScalarGridSpec(
                num_scalar_prefetch=0,
                grid=(n_row_tiles, d_hid_p // tile_k),
                in_specs=[
                    pl.BlockSpec((tile_rows, d_in_p), lambda i, k: (i, 0)),  # x
                    pl.BlockSpec((d_in_p, tile_k), lambda i, k: (0, k)),     # W1
                    pl.BlockSpec((1, tile_k), lambda i, k: (0, k)),          # b1
                    pl.BlockSpec((tile_k, d_in_p), lambda i, k: (k, 0)),     # W2
                    pl.BlockSpec((1, d_in_p), lambda i, k: (0, 0)),          # b2
                    pl.BlockSpec((1, d_in_p), lambda i, k: (0, 0)),          # gamma
                    pl.BlockSpec((1, d_in_p), lambda i, k: (0, 0)),          # beta
                ],
                out_specs=pl.BlockSpec((tile_rows, d_in_p),
                                       lambda i, k: (i, 0)),
                scratch_shapes=[pltpu.VMEM((tile_rows, d_in_p), jnp.float32)],
            ),
            compiler_params=compiler_params,
            cost_estimate=cost,
        )(x2, w1p, b1p, w2p, b2p, gp, bp)

    return out[:N, :d_in].reshape(B, S, d_in)


def _reference(x, w1, b1, w2, b2, gamma, beta, eps=1e-6):
    h = jnp.maximum(x @ w1 + b1, 0.0)
    y = h @ w2 + b2 + x
    mean = jnp.mean(y, axis=-1, keepdims=True)
    var = jnp.mean((y - mean) ** 2, axis=-1, keepdims=True)
    return (y - mean) * jax.lax.rsqrt(var + eps) * gamma + beta


if __name__ == "__main__":
    key = jax.random.PRNGKey(0)
    B, S, d_in, d_hid = 2, 8, 32, 64

    k = jax.random.split(key, 5)
    x = jax.random.normal(k[0], (B, S, d_in), dtype=jnp.float32)
    # Deterministic synthetic parameters (shapes per nn.Linear / nn.LayerNorm,
    # stored transposed so the kernel computes x @ W).
    w1 = jax.random.normal(k[1], (d_in, d_hid), dtype=jnp.float32) * 0.1
    b1 = jax.random.normal(k[2], (d_hid,), dtype=jnp.float32) * 0.1
    w2 = jax.random.normal(k[3], (d_hid, d_in), dtype=jnp.float32) * 0.1
    b2 = jax.random.normal(k[4], (d_in,), dtype=jnp.float32) * 0.1
    gamma = jnp.ones((d_in,), dtype=jnp.float32)
    beta = jnp.zeros((d_in,), dtype=jnp.float32)

    # Test 1: default path -- weights fit in VMEM, k axis collapsed.
    out = positionwise_feed_forward(x, w1, b1, w2, b2, gamma, beta)
    out = jax.block_until_ready(out)
    ref = _reference(x, w1, b1, w2, b2, gamma, beta)
    assert out.shape == (B, S, d_in)
    assert jnp.allclose(out, ref, atol=1e-4, rtol=1e-4), float(
        jnp.max(jnp.abs(out - ref)))

    # Test 2: force the k-chunked accumulator path by constraining the tile
    # budget (exercises the acc_ref init/accumulate/finalize pl.when path).
    d_hid2 = 256
    k2 = jax.random.split(jax.random.PRNGKey(1), 3)
    w1b = jax.random.normal(k2[0], (d_in, d_hid2), dtype=jnp.float32) * 0.1
    b1b = jax.random.normal(k2[1], (d_hid2,), dtype=jnp.float32) * 0.1
    w2b = jax.random.normal(k2[2], (d_hid2, d_in), dtype=jnp.float32) * 0.1
    out2 = positionwise_feed_forward(x, w1b, b1b, w2b, b2, gamma, beta,
                                     tile_rows=128, tile_k=128,
                                     vmem_budget_bytes=512 << 10)
    out2 = jax.block_until_ready(out2)
    ref2 = _reference(x, w1b, b1b, w2b, b2, gamma, beta)
    assert jnp.allclose(out2, ref2, atol=1e-4, rtol=1e-4), float(
        jnp.max(jnp.abs(out2 - ref2)))

    print("KERNEL_OK")
</pallas_src>

<mosaic_0001>
module attributes {stable_mosaic.version = 11 : i64} {
  func.func @_ffn_kernel_fused(%arg0: i32, %arg1: memref<16x128xf32, #tpu.memory_space<vmem>>, %arg2: memref<128x128xf32, #tpu.memory_space<vmem>>, %arg3: memref<1x128xf32, #tpu.memory_space<vmem>>, %arg4: memref<128x128xf32, #tpu.memory_space<vmem>>, %arg5: memref<1x128xf32, #tpu.memory_space<vmem>>, %arg6: memref<1x128xf32, #tpu.memory_space<vmem>>, %arg7: memref<1x128xf32, #tpu.memory_space<vmem>>, %arg8: memref<16x128xf32, #tpu.memory_space<vmem>>) attributes {dimension_semantics = [#tpu.dimension_semantics<parallel>], iteration_bounds = array<i64: 1>, scalar_prefetch = 0 : i64, scratch_operands = 0 : i64, tpu.core_type = #tpu.core_type<tc>, window_params = [{transform_indices = @transform_0, window_bounds = array<i64: 16, 128>}, {pipeline_mode = #tpu.pipeline_mode<synchronous>, transform_indices = @transform_1, window_bounds = array<i64: 128, 128>}, {pipeline_mode = #tpu.pipeline_mode<synchronous>, transform_indices = @transform_2, window_bounds = array<i64: 1, 128>}, {pipeline_mode = #tpu.pipeline_mode<synchronous>, transform_indices = @transform_3, window_bounds = array<i64: 128, 128>}, {pipeline_mode = #tpu.pipeline_mode<synchronous>, transform_indices = @transform_4, window_bounds = array<i64: 1, 128>}, {pipeline_mode = #tpu.pipeline_mode<synchronous>, transform_indices = @transform_5, window_bounds = array<i64: 1, 128>}, {pipeline_mode = #tpu.pipeline_mode<synchronous>, transform_indices = @transform_6, window_bounds = array<i64: 1, 128>}, {transform_indices = @transform_7, window_bounds = array<i64: 16, 128>}]} {
    %c0 = arith.constant 0 : index
    %c0_0 = arith.constant 0 : index
    %0 = vector.load %arg1[%c0, %c0_0] : memref<16x128xf32, #tpu.memory_space<vmem>>, vector<16x128xf32>
    %c0_1 = arith.constant 0 : index
    %c0_2 = arith.constant 0 : index
    %1 = vector.load %arg2[%c0_1, %c0_2] : memref<128x128xf32, #tpu.memory_space<vmem>>, vector<128x128xf32>
    %cst = arith.constant dense<0.000000e+00> : vector<16x128xf32>
    %2 = tpu.matmul %0, %1, %cst {dimension_numbers = #tpu.dot_dimension_numbers<[1], [0], [0], [1], [0, 0, 1, 1], [], []>} : vector<16x128xf32>, vector<128x128xf32>, vector<16x128xf32> -> vector<16x128xf32>
    %c0_3 = arith.constant 0 : index
    %c0_4 = arith.constant 0 : index
    %3 = vector.load %arg3[%c0_3, %c0_4] : memref<1x128xf32, #tpu.memory_space<vmem>>, vector<1x128xf32>
    %4 = vector.broadcast %3 : vector<1x128xf32> to vector<16x128xf32>
    %5 = arith.addf %2, %4 : vector<16x128xf32>
    %cst_5 = arith.constant 0.000000e+00 : f32
    %6 = vector.broadcast %cst_5 : f32 to vector<16x128xf32>
    %7 = arith.maximumf %5, %6 : vector<16x128xf32>
    %c0_6 = arith.constant 0 : index
    %c0_7 = arith.constant 0 : index
    %8 = vector.load %arg4[%c0_6, %c0_7] : memref<128x128xf32, #tpu.memory_space<vmem>>, vector<128x128xf32>
    %cst_8 = arith.constant dense<0.000000e+00> : vector<16x128xf32>
    %9 = tpu.matmul %7, %8, %cst_8 {dimension_numbers = #tpu.dot_dimension_numbers<[1], [0], [0], [1], [0, 0, 1, 1], [], []>} : vector<16x128xf32>, vector<128x128xf32>, vector<16x128xf32> -> vector<16x128xf32>
    %c0_9 = arith.constant 0 : index
    %c0_10 = arith.constant 0 : index
    %10 = vector.load %arg5[%c0_9, %c0_10] : memref<1x128xf32, #tpu.memory_space<vmem>>, vector<1x128xf32>
    %11 = vector.broadcast %10 : vector<1x128xf32> to vector<16x128xf32>
    %12 = arith.addf %9, %11 : vector<16x128xf32>
    %13 = arith.addf %12, %0 : vector<16x128xf32>
    %cst_11 = arith.constant dense<0.000000e+00> : vector<16xf32>
    %14 = vector.multi_reduction <add>, %13, %cst_11 [1] : vector<16x128xf32> to vector<16xf32>
    %15 = vector.shape_cast %14 : vector<16xf32> to vector<16x1xf32>
    %cst_12 = arith.constant 3.125000e-02 : f32
    %16 = vector.broadcast %cst_12 : f32 to vector<16x1xf32>
    %17 = arith.mulf %15, %16 : vector<16x1xf32>
    %18 = arith.mulf %13, %13 : vector<16x128xf32>
    %cst_13 = arith.constant dense<0.000000e+00> : vector<16xf32>
    %19 = vector.multi_reduction <add>, %18, %cst_13 [1] : vector<16x128xf32> to vector<16xf32>
    %20 = vector.shape_cast %19 : vector<16xf32> to vector<16x1xf32>
    %cst_14 = arith.constant 3.125000e-02 : f32
    %21 = vector.broadcast %cst_14 : f32 to vector<16x1xf32>
    %22 = arith.mulf %20, %21 : vector<16x1xf32>
    %23 = arith.mulf %17, %17 : vector<16x1xf32>
    %24 = arith.subf %22, %23 : vector<16x1xf32>
    %cst_15 = arith.constant 0.000000e+00 : f32
    %25 = vector.broadcast %cst_15 : f32 to vector<16x1xf32>
    %26 = arith.maximumf %24, %25 : vector<16x1xf32>
    %27 = vector.broadcast %17 : vector<16x1xf32> to vector<16x128xf32>
    %28 = arith.subf %13, %27 : vector<16x128xf32>
    %cst_16 = arith.constant 9.99999997E-7 : f32
    %29 = vector.broadcast %cst_16 : f32 to vector<16x1xf32>
    %30 = arith.addf %26, %29 : vector<16x1xf32>
    %31 = math.rsqrt %30 : vector<16x1xf32>
    %32 = vector.broadcast %31 : vector<16x1xf32> to vector<16x128xf32>
    %33 = arith.mulf %28, %32 : vector<16x128xf32>
    %c0_17 = arith.constant 0 : index
    %c0_18 = arith.constant 0 : index
    %34 = vector.load %arg6[%c0_17, %c0_18] : memref<1x128xf32, #tpu.memory_space<vmem>>, vector<1x128xf32>
    %35 = vector.broadcast %34 : vector<1x128xf32> to vector<16x128xf32>
    %36 = arith.mulf %33, %35 : vector<16x128xf32>
    %c0_19 = arith.constant 0 : index
    %c0_20 = arith.constant 0 : index
    %37 = vector.load %arg7[%c0_19, %c0_20] : memref<1x128xf32, #tpu.memory_space<vmem>>, vector<1x128xf32>
    %38 = vector.broadcast %37 : vector<1x128xf32> to vector<16x128xf32>
    %39 = arith.addf %36, %38 : vector<16x128xf32>
    %c0_21 = arith.constant 0 : index
    %c0_22 = arith.constant 0 : index
    %40 = vector.load %arg8[%c0_21, %c0_22] : memref<16x128xf32, #tpu.memory_space<vmem>>, vector<16x128xf32>
    tpu.vector_store %arg8[%c0_21, %c0_22], %39 {strides = array<i32>} : memref<16x128xf32, #tpu.memory_space<vmem>>, vector<16x128xf32>,
    return
  }
  func.func @transform_0(%arg0: i32) -> (i32, i32) {
    %c0_i32 = arith.constant 0 : i32
    %c0_i32_0 = arith.constant 0 : i32
    return %arg0, %c0_i32 : i32, i32
  }
  func.func @transform_1(%arg0: i32) -> (i32, i32) {
    %c0_i32 = arith.constant 0 : i32
    %c0_i32_0 = arith.constant 0 : i32
    %c0_i32_1 = arith.constant 0 : i32
    return %c0_i32, %c0_i32_0 : i32, i32
  }
  func.func @transform_2(%arg0: i32) -> (i32, i32) {
    %c0_i32 = arith.constant 0 : i32
    %c0_i32_0 = arith.constant 0 : i32
    %c0_i32_1 = arith.constant 0 : i32
    return %c0_i32, %c0_i32_0 : i32, i32
  }
  func.func @transform_3(%arg0: i32) -> (i32, i32) {
    %c0_i32 = arith.constant 0 : i32
    %c0_i32_0 = arith.constant 0 : i32
    %c0_i32_1 = arith.constant 0 : i32
    return %c0_i32, %c0_i32_0 : i32, i32
  }
  func.func @transform_4(%arg0: i32) -> (i32, i32) {
    %c0_i32 = arith.constant 0 : i32
    %c0_i32_0 = arith.constant 0 : i32
    %c0_i32_1 = arith.constant 0 : i32
    return %c0_i32, %c0_i32_0 : i32, i32
  }
  func.func @transform_5(%arg0: i32) -> (i32, i32) {
    %c0_i32 = arith.constant 0 : i32
    %c0_i32_0 = arith.constant 0 : i32
    %c0_i32_1 = arith.constant 0 : i32
    return %c0_i32, %c0_i32_0 : i32, i32
  }
  func.func @transform_6(%arg0: i32) -> (i32, i32) {
    %c0_i32 = arith.constant 0 : i32
    %c0_i32_0 = arith.constant 0 : i32
    %c0_i32_1 = arith.constant 0 : i32
    return %c0_i32, %c0_i32_0 : i32, i32
  }
  func.func @transform_7(%arg0: i32) -> (i32, i32) {
    %c0_i32 = arith.constant 0 : i32
    %c0_i32_0 = arith.constant 0 : i32
    return %arg0, %c0_i32 : i32, i32
  }
}

</mosaic_0001>

<bundles_post_ra>
// kernel: tpu_custom_call.1
= control target key start
LH: loop header
LB: loop body
LE: loop exit
PB: predicated region body
PF: predicated region fallthrough
CT: control target
= control target key end

     0   :  { %12 = vsyncpa [#allocation3], 0  ;;  %s934_s0 = inlined_call_operand.hbm [shape: f32[16,128], index: 0, kind: input, shape index: {}]   ;;  %s935_s1 = inlined_call_operand.hbm [shape: f32[128,128], index: 1, kind: input, shape index: {}]   ;;  %s936_s2 = inlined_call_operand.hbm [shape: f32[1,128], index: 2, kind: input, shape index: {}]   ;;  %s937_s3 = inlined_call_operand.hbm [shape: f32[128,128], index: 3, kind: input, shape index: {}]   ;;  %s938_s4 = inlined_call_operand.hbm [shape: f32[1,128], index: 4, kind: input, shape index: {}]   ;;  %s939_s5 = inlined_call_operand.hbm [shape: f32[1,128], index: 5, kind: input, shape index: {}]   ;;  %s940_s6 = inlined_call_operand.hbm [shape: f32[1,128], index: 6, kind: input, shape index: {}]   ;;  %s941_s7 = inlined_call_operand.hbm [shape: f32[16,128], index: 7, kind: output, shape index: {}]  }
   0x1   :  { %13 = vsyncpa [#allocation6], 0 }
   0x2   :  { %14 = vsyncpa [#allocation9], 0 }
   0x3   :  { %15 = vsyncpa [#allocation12], 0 }
   0x4   :  { %16 = vsyncpa [#allocation4], 0  ;;  %s758_s24 = smov [#allocation5]   ;;  %s759_s26 = smov [#allocation8]  }
   0x5   :  { %s34_s25 = sshll.u32 %s758_s24, 4  ;;  %s56_s27 = sshll.u32 %s759_s26, 4  ;;  %s35_s25 = int_to_ptr.vmem [resolvable:$true] %s34_s25  ;;  %s808_s27 = int_to_ptr.vmem [resolvable:$true] %s56_s27 }
   0x6   :  { %s572_s30 = scalar_lea.hbm %s935_s1, 2048 }
   0x7   :  { %p573_p0 = scmp.ne.s32.totalorder %s935_s1, %s572_s30  ;;  %p576_p1 = scmp.lt.u32.totalorder %s572_s30, %s935_s1 }
   0x9   :  { %p578_p2 = pnand %p576_p1, %p573_p0 }
   0xb   :  { %581 = shalt.err (!%p578_p2)
}
   0xc   :  { %s582_s12 = scalar_lea.vmem %s35_s25, 2048  ;;  %p587_p4 = scmp.lt.s32.totalorder %s35_s25, %s35_s25 }
   0xd   :  { %p583_p3 = scmp.ne.s32.totalorder %s35_s25, %s582_s12  ;;  %p588_p5 = scmp.lt.s32.totalorder %s582_s12, %s582_s12 }
   0xf   :  { %p589_p6 = por %p588_p5, %p587_p4 }
  0x11   :  { %p590_p7 = pnand %p589_p6, %p583_p3 }
  0x13   :  { %593 = shalt.err (!%p590_p7)
}
  0x14   :  { %s760_s13 = smov 128   ;;  %s761_s14 = smov 8  }
  0x15   :  { %40 = dma.hbm_to_vmem [thread:$0]  %s935_s1, 2048, %s35_s25, [#allocation6], %s760_s13, %s760_s13, %s761_s14  }
  0x16   :  { %s594_s19 = scalar_lea.hbm %s937_s3, 2048 }
  0x17   :  { %p595_p8 = scmp.ne.s32.totalorder %s937_s3, %s594_s19  ;;  %p598_p9 = scmp.lt.u32.totalorder %s594_s19, %s937_s3 }
  0x19   :  { %p600_p10 = pnand %p598_p9, %p595_p8 }
  0x1b   :  { %603 = shalt.err (!%p600_p10)
}
  0x1c   :  { %s604_s24 = scalar_lea.vmem %s808_s27, 2048  ;;  %p609_p12 = scmp.lt.s32.totalorder %s808_s27, %s808_s27 }
  0x1d   :  { %p605_p11 = scmp.ne.s32.totalorder %s808_s27, %s604_s24  ;;  %p610_p13 = scmp.lt.s32.totalorder %s604_s24, %s604_s24 }
  0x1f   :  { %p611_p0 = por %p610_p13, %p609_p12 }
  0x21   :  { %p612_p1 = pnand %p611_p0, %p605_p11 }
  0x23   :  { %615 = shalt.err (!%p612_p1)
}
  0x24   :  { %62 = dma.hbm_to_vmem [thread:$0]  %s937_s3, 2048, %s808_s27, [#allocation9], %s760_s13, %s760_s13, %s761_s14  }
  0x25   :  { %s762_s26 = smov [#allocation11]   ;;  %s763_s29 = smov [#allocation2]  }
  0x26   :  { %s79_s28 = sshll.u32 %s762_s26, 4  ;;  %s22_s30 = sshll.u32 %s763_s29, 4  ;;  %s80_s28 = int_to_ptr.vmem [resolvable:$true] %s79_s28  ;;  %s845_s30 = int_to_ptr.vmem [resolvable:$true] %s22_s30 }
  0x27   :  { %s616_s10 = scalar_lea.hbm %s939_s5, 16 }
  0x28   :  { %p617_p2 = scmp.ne.s32.totalorder %s939_s5, %s616_s10  ;;  %p620_p3 = scmp.lt.u32.totalorder %s616_s10, %s939_s5 }
  0x2a   :  { %p622_p4 = pnand %p620_p3, %p617_p2 }
  0x2c   :  { %625 = shalt.err (!%p622_p4)
}
  0x2d   :  { %s626_s3 = scalar_lea.vmem %s80_s28, 16  ;;  %s630_s27 = scalar_lea.vmem %s80_s28, 32 }
  0x2e   :  { %p627_p5 = scmp.ne.s32.totalorder %s80_s28, %s626_s3  ;;  %p631_p6 = scmp.lt.s32.totalorder %s80_s28, %s80_s28 }
  0x2f   :  { %p632_p7 = scmp.lt.s32.totalorder %s630_s27, %s626_s3 }
  0x31   :  { %p633_p8 = por %p632_p7, %p631_p6 }
  0x33   :  { %p634_p9 = pnand %p633_p8, %p627_p5 }
  0x35   :  { %637 = shalt.err (!%p634_p9)
}
  0x36   :  { %82 = dma.hbm_to_vmem [thread:$0]  %s939_s5, 16, %s80_s28, [#allocation12]  }
  0x37   :  { %s638_s21 = scalar_lea.hbm %s934_s0, 256 }
  0x38   :  { %p639_p10 = scmp.ne.s32.totalorder %s934_s0, %s638_s21  ;;  %p642_p11 = scmp.lt.u32.totalorder %s638_s21, %s934_s0 }
  0x3a   :  { %p644_p12 = pnand %p642_p11, %p639_p10 }
  0x3c   :  { %647 = shalt.err (!%p644_p12)
}
  0x3d   :  { %s648_s25 = scalar_lea.vmem %s845_s30, 256  ;;  %p653_p0 = scmp.lt.s32.totalorder %s845_s30, %s845_s30 }
  0x3e   :  { %p649_p13 = scmp.ne.s32.totalorder %s845_s30, %s648_s25  ;;  %p654_p1 = scmp.lt.s32.totalorder %s648_s25, %s648_s25 }
  0x40   :  { %p655_p2 = por %p654_p1, %p653_p0 }
  0x42   :  { %p656_p3 = pnand %p655_p2, %p649_p13 }
  0x44   :  { %659 = shalt.err (!%p656_p3)
}
  0x45   :  { %28 = dma.hbm_to_vmem [thread:$0]  %s934_s0, 256, %s845_s30, [#allocation3], %s760_s13, %s760_s13, %s761_s14  }
  0x46   :  { %s764_s28 = smov [#allocation7]   ;;  %s765_s8 = smov [#allocation10]  }
  0x47   :  { %s47_s29 = sshll.u32 %s764_s28, 4  ;;  %s69_s9 = sshll.u32 %s765_s8, 4  ;;  %s48_s29 = int_to_ptr.vmem [resolvable:$true] %s47_s29  ;;  %s70_s9 = int_to_ptr.vmem [resolvable:$true] %s69_s9 }
  0x48   :  { %s660_s12 = scalar_lea.hbm %s936_s2, 16 }
  0x49   :  { %p661_p4 = scmp.ne.s32.totalorder %s936_s2, %s660_s12  ;;  %p664_p5 = scmp.lt.u32.totalorder %s660_s12, %s936_s2 }
  0x4b   :  { %p666_p6 = pnand %p664_p5, %p661_p4 }
  0x4d   :  { %669 = shalt.err (!%p666_p6)
}
  0x4e   :  { %s670_s0 = scalar_lea.vmem %s48_s29, 16  ;;  %s674_s30 = scalar_lea.vmem %s48_s29, 32 }
  0x4f   :  { %p671_p7 = scmp.ne.s32.totalorder %s48_s29, %s670_s0  ;;  %p675_p8 = scmp.lt.s32.totalorder %s48_s29, %s48_s29 }
  0x50   :  { %p676_p9 = scmp.lt.s32.totalorder %s674_s30, %s670_s0 }
  0x52   :  { %p677_p10 = por %p676_p9, %p675_p8 }
  0x54   :  { %p678_p11 = pnand %p677_p10, %p671_p7 }
  0x56   :  { %681 = shalt.err (!%p678_p11)
}
  0x57   :  { %50 = dma.hbm_to_vmem [thread:$0]  %s936_s2, 16, %s48_s29, [#allocation6]  }
  0x58   :  { %s682_s21 = scalar_lea.hbm %s938_s4, 16 }
  0x59   :  { %p683_p12 = scmp.ne.s32.totalorder %s938_s4, %s682_s21  ;;  %p686_p13 = scmp.lt.u32.totalorder %s682_s21, %s938_s4 }
  0x5b   :  { %p688_p0 = pnand %p686_p13, %p683_p12 }
  0x5d   :  { %691 = shalt.err (!%p688_p0)
}
  0x5e   :  { %s692_s25 = scalar_lea.vmem %s70_s9, 16  ;;  %s696_s5 = scalar_lea.vmem %s70_s9, 32 }
  0x5f   :  { %p693_p1 = scmp.ne.s32.totalorder %s70_s9, %s692_s25  ;;  %p697_p2 = scmp.lt.s32.totalorder %s70_s9, %s70_s9 }
  0x60   :  { %p698_p3 = scmp.lt.s32.totalorder %s696_s5, %s692_s25 }
  0x62   :  { %p699_p4 = por %p698_p3, %p697_p2 }
  0x64   :  { %p700_p5 = pnand %p699_p4, %p693_p1 }
  0x66   :  { %703 = shalt.err (!%p700_p5)
}
  0x67   :  { %72 = dma.hbm_to_vmem [thread:$0]  %s938_s4, 16, %s70_s9, [#allocation9]  }
  0x68   :  { %s766_s28 = smov [#allocation13]   ;;  %s704_s11 = scalar_lea.hbm %s940_s6, 16 }
  0x69   :  { %s89_s29 = sshll.u32 %s766_s28, 4  ;;  %p705_p6 = scmp.ne.s32.totalorder %s940_s6, %s704_s11  ;;  %s90_s29 = int_to_ptr.vmem [resolvable:$true] %s89_s29 }
  0x6a   :  { %p708_p7 = scmp.lt.u32.totalorder %s704_s11, %s940_s6 }
  0x6c   :  { %p710_p8 = pnand %p708_p7, %p705_p6 }
  0x6e   :  { %713 = shalt.err (!%p710_p8)
}
  0x6f   :  { %s714_s27 = scalar_lea.vmem %s90_s29, 16  ;;  %s718_s4 = scalar_lea.vmem %s90_s29, 32 }
  0x70   :  { %p715_p9 = scmp.ne.s32.totalorder %s90_s29, %s714_s27  ;;  %p719_p10 = scmp.lt.s32.totalorder %s90_s29, %s90_s29 }
  0x71   :  { %p720_p11 = scmp.lt.s32.totalorder %s718_s4, %s714_s27 }
  0x73   :  { %p721_p12 = por %p720_p11, %p719_p10 }
  0x75   :  { %p722_p13 = pnand %p721_p12, %p715_p9 }
  0x77   :  { %725 = shalt.err (!%p722_p13)
}
  0x78   :  { %92 = dma.hbm_to_vmem [thread:$0]  %s940_s6, 16, %s90_s29, [#allocation12]  }
  0x79   :  { %748 = dma.done.wait [#allocation3], 256  }
  0x7a   :  { %749 = vsyncadd [#allocation3], 4294967040 }
  0x7b   :  { %750 = dma.done.wait [#allocation6], 2064  }
  0x7c   :  { %751 = vsyncadd [#allocation6], 4294965232 }
  0x7d   :  { %752 = dma.done.wait [#allocation9], 2064  }
  0x7e   :  { %753 = vsyncadd [#allocation9], 4294965232 }
  0x7f   :  { %754 = dma.done.wait [#allocation12], 32  }
  0x80   :  { %755 = vsyncadd [#allocation12], 4294967264  ;;  %v116_v0 = vld [vmem:[#allocation5] sm:$0xff]  ;;  %v117_v1 = vld [vmem:[#allocation5 + $0x8] sm:$0xff]  ;;  %s767_s6 = smov [#allocation14]  }
  0x81   :  { %v118_v2 = vld [vmem:[#allocation5 + $0x10] sm:$0xff]  ;;  %v494_v3 = vpack.c.bf16 %v117_v1, %v116_v0  ;;  %v119_v4 = vld [vmem:[#allocation5 + $0x18] sm:$0xff]  ;;  %v120_v6 = vld [vmem:[#allocation5 + $0x20] sm:$0xff]  ;;  %s369_s30 = sshll.u32 %s767_s6, 4  ;;  %s370_s30 = int_to_ptr.vmem [resolvable:$true] %s369_s30 }
  0x82   :  { %v498_v5 = vpack.c.bf16 %v119_v4, %v118_v2  ;;  %v121_v7 = vld [vmem:[#allocation5 + $0x28] sm:$0xff]  ;;  %v122_v9 = vld [vmem:[#allocation5 + $0x30] sm:$0xff]  ;;  %v123_v10 = vld [vmem:[#allocation5 + $0x38] sm:$0xff]  ;;  %s726_s17 = scalar_lea.vmem %s370_s30, 256  ;;  %p731_p1 = scmp.lt.s32.totalorder %s370_s30, %s370_s30 }
  0x83   :  { %495 = vmatprep.subr.bf16.mxu0 %v494_v3  ;;  %v502_v8 = vpack.c.bf16 %v121_v7, %v120_v6  ;;  %v915_v11 = vld [vmem:[#allocation2] sm:$0xff]  ;;  %v216_v12 = vld [vmem:[#allocation8] sm:$0xff]  ;;  %v219_v16 = vld [vmem:[#allocation8 + $0x18] sm:$0xff]  ;;  %v506_v20 = vpack.c.bf16 %v123_v10, %v122_v9  ;;  %p727_p0 = scmp.ne.s32.totalorder %s370_s30, %s726_s17  ;;  %p732_p2 = scmp.lt.s32.totalorder %s726_s17, %s726_s17 }
  0x84   :  { %497 = vmatpush3.bf16.msra.mxu0 %v494_v3  ;;  %456 = vmatprep.mubr.f32.mxu0 %v915_v11  ;;  %v217_v13 = vld [vmem:[#allocation8 + $0x8] sm:$0xff]  ;;  %v218_v14 = vld [vmem:[#allocation8 + $0x10] sm:$0xff]  ;;  %v220_v18 = vld [vmem:[#allocation8 + $0x20] sm:$0xff] }
  0x85   :  { %499 = vmatprep.subr.bf16.mxu0 %v498_v5  ;;  %v526_v15 = vpack.c.bf16 %v217_v13, %v216_v12  ;;  %v530_v17 = vpack.c.bf16 %v219_v16, %v218_v14  ;;  %v221_v19 = vld [vmem:[#allocation8 + $0x28] sm:$0xff]  ;;  %v124_v21 = vld [vmem:[#allocation5 + $0x40] sm:$0xff]  ;;  %v222_v24 = vld [vmem:[#allocation8 + $0x30] sm:$0xff]  ;;  %p733_p3 = por %p732_p2, %p731_p1 }
  0x86   :  { %v125_v22 = vld [vmem:[#allocation5 + $0x48] sm:$0xff]  ;;  %v534_v23 = vpack.c.bf16 %v221_v19, %v220_v18  ;;  %v223_v25 = vld [vmem:[#allocation8 + $0x38] sm:$0xff]  ;;  %v126_v27 = vld [vmem:[#allocation5 + $0x50] sm:$0xff] }
  0x87   :  { %527 = vmatprep.subr.bf16.mxu1 %v526_v15  ;;  %v510_v26 = vpack.c.bf16 %v125_v22, %v124_v21  ;;  %v127_v28 = vld [vmem:[#allocation5 + $0x58] sm:$0xff]  ;;  %v538_v29 = vpack.c.bf16 %v223_v25, %v222_v24  ;;  %v224_v30 = vld [vmem:[#allocation8 + $0x40] sm:$0xff]  ;;  %v225_v31 = vld [vmem:[#allocation8 + $0x48] sm:$0xff]  ;;  %p734_p4 = pnand %p733_p3, %p727_p0 }
  0x88   :  { %501 = vmatpush3.bf16.msra.mxu0 %v498_v5  ;;  %529 = vmatpush3.bf16.msra.mxu1 %v526_v15  ;;  %v514_v32 = vpack.c.bf16 %v127_v28, %v126_v27  ;;  %v128_v33 = vld [vmem:[#allocation5 + $0x60] sm:$0xff]  ;;  %v129_v34 = vld [vmem:[#allocation5 + $0x68] sm:$0xff]  ;;  %v542_v35 = vpack.c.bf16 %v225_v31, %v224_v30  ;;  %v226_v36 = vld [vmem:[#allocation8 + $0x50] sm:$0xff] }
  0x89   :  { %503 = vmatprep.subr.bf16.mxu0 %v502_v8  ;;  %531 = vmatprep.subr.bf16.mxu1 %v530_v17  ;;  %v227_v37 = vld [vmem:[#allocation8 + $0x58] sm:$0xff]  ;;  %v518_v38 = vpack.c.bf16 %v129_v34, %v128_v33  ;;  %v130_v39 = vld [vmem:[#allocation5 + $0x70] sm:$0xff]  ;;  %v228_v42 = vld [vmem:[#allocation8 + $0x60] sm:$0xff] }
  0x8a   :  { %v131_v40 = vld [vmem:[#allocation5 + $0x78] sm:$0xff]  ;;  %v546_v41 = vpack.c.bf16 %v227_v37, %v226_v36  ;;  %v229_v43 = vld [vmem:[#allocation8 + $0x68] sm:$0xff]  ;;  %v384_v50 = vld [vmem:[#allocation7] ss:$0 sm:$0xff] }
  0x8b   :  { %v522_v44 = vpack.c.bf16 %v131_v40, %v130_v39  ;;  %v550_v45 = vpack.c.bf16 %v229_v43, %v228_v42  ;;  %v115_v46 = vld [vmem:[#allocation2 + $0x8] sm:$0xff]  ;;  %v385_v57 = vld [vmem:[#allocation10] ss:$0 sm:$0xff]  ;;  %v387_v22 = vld [vmem:[#allocation13] ss:$0 sm:$0xff] }
  0x8c   :  { %505 = vmatpush3.bf16.msra.mxu0 %v502_v8  ;;  %533 = vmatpush3.bf16.msra.mxu1 %v530_v17  ;;  %v230_v47 = vld [vmem:[#allocation8 + $0x70] sm:$0xff]  ;;  %v231_v48 = vld [vmem:[#allocation8 + $0x78] sm:$0xff] }
  0x8d   :  { %507 = vmatprep.subr.bf16.mxu0 %v506_v20  ;;  %535 = vmatprep.subr.bf16.mxu1 %v534_v23  ;;  %v554_v49 = vpack.c.bf16 %v231_v48, %v230_v47 }
  0x90   :  { %509 = vmatpush3.bf16.msra.mxu0 %v506_v20  ;;  %537 = vmatpush3.bf16.msra.mxu1 %v534_v23  ;;  %v386_v20 = vld [vmem:[#allocation11] ss:$0 sm:$0xff] }
  0x91   :  { %511 = vmatprep.subr.bf16.mxu0 %v510_v26  ;;  %539 = vmatprep.subr.bf16.mxu1 %v538_v29 }
  0x94   :  { %513 = vmatpush3.bf16.msra.mxu0 %v510_v26  ;;  %541 = vmatpush3.bf16.msra.mxu1 %v538_v29 }
  0x95   :  { %515 = vmatprep.subr.bf16.mxu0 %v514_v32  ;;  %543 = vmatprep.subr.bf16.mxu1 %v542_v35 }
  0x98   :  { %517 = vmatpush3.bf16.msra.mxu0 %v514_v32  ;;  %545 = vmatpush3.bf16.msra.mxu1 %v542_v35 }
  0x99   :  { %519 = vmatprep.subr.bf16.mxu0 %v518_v38  ;;  %547 = vmatprep.subr.bf16.mxu1 %v546_v41 }
  0x9c   :  { %521 = vmatpush3.bf16.msra.mxu0 %v518_v38  ;;  %549 = vmatpush3.bf16.msra.mxu1 %v546_v41 }
  0x9d   :  { %523 = vmatprep.subr.bf16.mxu0 %v522_v44  ;;  %551 = vmatprep.subr.bf16.mxu1 %v550_v45 }
  0xa0   :  { %525 = vmatpush3.bf16.msra.mxu0 %v522_v44  ;;  %553 = vmatpush3.bf16.msra.mxu1 %v550_v45 }
  0xa1   :  { %555 = vmatprep.subr.bf16.mxu1 %v554_v49 }
  0xa3   :  { %457 = vmatmul.mubr.f32.vlgmr.msra.gmra.mrb[0].mxu0 %v115_v46 }
  0xa4   :  { %557 = vmatpush3.bf16.msra.mxu1 %v554_v49 }
 0x176   :  { %v458_v51 = vpop.f32.mrb[0].mxu0 }
 0x177   :  { %v211_v52 = vadd.f32 %v458_v51, %v384_v50  ;;  %v205_v53 = vpop.f32.mrb[1].mxu0 }
 0x178   :  { %v206_v54 = vadd.f32 %v384_v50, %v205_v53 }
 0x179   :  { %v215_v56 = vmax.f32 %v211_v52, 0.0 }
 0x17a   :  { %v214_v55 = vmax.f32 %v206_v54, 0.0 }
 0x17c   :  { %491 = vmatprep.mubr.f32.mxu1 %v214_v55 }
 0x17d   :  { %492 = vmatmul.mubr.f32.vlgmr.msra.gmra.mrb[0].mxu1 %v215_v56 }
 0x250   :  { %v493_v58 = vpop.f32.mrb[0].mxu1 }
 0x251   :  { %v305_v59 = vpop.f32.mrb[1].mxu1  ;;  %v311_v60 = vadd.f32 %v493_v58, %v385_v57 }
 0x252   :  { %v306_v61 = vadd.f32 %v385_v57, %v305_v59 }
 0x253   :  { %v315_v63 = vadd.f32 %v311_v60, %v115_v46 }
 0x254   :  { %v314_v62 = vadd.f32 %v306_v61, %v915_v11 }
 0x255   :  { %v323_v1 = vmul.f32 %v315_v63, %v315_v63 }
 0x256   :  { %316 = vadd.xlane.f32.xlu0 %v314_v62  ;;  %v322_v0 = vmul.f32 %v314_v62, %v314_v62 }
 0x258   :  { %324 = vadd.xlane.f32.xlu1 %v322_v0 }
 0x25a   :  { %318 = vadd.xlane.f32.xlu0 %v315_v63 }
 0x25c   :  { %326 = vadd.xlane.f32.xlu1 %v323_v1 }
 0x2e3   :  { %v317_v2 = vpop.xlane.xlu0 %316 }
 0x2e4   :  { %v320_v3 = vmul.f32 0.03125, %v317_v2 }
 0x2e5   :  { %v325_v4 = vpop.xlane.xlu1 %324 }
 0x2e6   :  { %v330_v5 = vmul.f32 %v320_v3, %v320_v3  ;;  %v328_v6 = vmul.f32 0.03125, %v325_v4  ;;  %v336_v18 = vsub.f32 %v314_v62, %v320_v3 }
 0x2e7   :  { %v319_v7 = vpop.xlane.xlu0 %318 }
 0x2e8   :  { %v332_v8 = vsub.f32 %v328_v6, %v330_v5  ;;  %v321_v9 = vmul.f32 0.03125, %v319_v7 }
 0x2e9   :  { %v327_v10 = vpop.xlane.xlu1 %326 }
 0x2ea   :  { %v334_v12 = vmax.f32 %v332_v8, 0.0  ;;  %v331_v13 = vmul.f32 %v321_v9, %v321_v9  ;;  %v329_v14 = vmul.f32 0.03125, %v327_v10  ;;  %v337_v23 = vsub.f32 %v315_v63, %v321_v9 }
 0x2ec   :  { %v338_v11 = vadd.f32 1e-06, %v334_v12  ;;  %v333_v15 = vsub.f32 %v329_v14, %v331_v13 }
 0x2ee   :  { %568 = vrsqrt.f32 %v338_v11  ;;  %v335_v16 = vmax.f32 %v333_v15, 0.0 }
 0x2f0   :  { %v339_v17 = vadd.f32 1e-06, %v335_v16 }
 0x2f2   :  { %570 = vrsqrt.f32 %v339_v17 }
 0x2f8   :  { %v569_v19 = vpop.eup %568 }
 0x2f9   :  { %v342_v21 = vmul.f32 %v569_v19, %v336_v18 }
 0x2fb   :  { %v351_v24 = vmul.f32 %v386_v20, %v342_v21 }
 0x2fc   :  { %v571_v25 = vpop.eup %570 }
 0x2fd   :  { %v343_v26 = vmul.f32 %v571_v25, %v337_v23  ;;  %v360_v27 = vadd.f32 %v387_v22, %v351_v24 }
 0x2ff   :  { %v352_v28 = vmul.f32 %v386_v20, %v343_v26  ;;  %362 = vst [vmem:[#allocation14] sm:$0xff] %v360_v27 }
 0x301   :  { %v361_v29 = vadd.f32 %v387_v22, %v352_v28 }
 0x303   :  { %363 = vst [vmem:[#allocation14 + $0x8] sm:$0xff] %v361_v29 }
 0x304   :  { %737 = shalt.err (!%p734_p4)
}
 0x305   :  { %s738_s20 = scalar_lea.hbm %s941_s7, 256 }
 0x306   :  { %p739_p5 = scmp.ne.s32.totalorder %s941_s7, %s738_s20  ;;  %p742_p6 = scmp.lt.u32.totalorder %s738_s20, %s941_s7 }
 0x308   :  { %p744_p7 = pnand %p742_p6, %p739_p5 }
 0x30a   :  { %747 = shalt.err (!%p744_p7)
}
 0x30b   :  { %375 = dma.vmem_to_hbm [thread:$0]  %s370_s30, 256, %s941_s7, [#allocation4], %s760_s13, %s760_s13, %s761_s14  }
 0x30c   :  { %756 = dma.done.wait [#allocation4], 256  }
 0x30d   :  { %757 = vsyncadd [#allocation4], 4294967040 }
 0x30e   :  { %379 = vsyncpa [#allocation3], 1 }
 0x30f   :  { %380 = vsyncpa [#allocation6], 1 }
 0x310   :  { %381 = vsyncpa [#allocation9], 1 }
 0x311   :  { %382 = vsyncpa [#allocation12], 1 }
 0x312   :  { %383 = vsyncpa [#allocation4], 1 }

</bundles_post_ra>
